<compile_context>
chip_gen: v6e
topology: v6e:2x2x1
jax: 0.10.0
libtpu: 0.0.40
codegen_flags: <defaults>
</compile_context>

<pallas_src>
import functools

import jax
import jax.numpy as jnp
from jax.experimental import pallas as pl
from jax.experimental.pallas import tpu as pltpu


def _round_up(n, m):
    return ((n + m - 1) // m) * m


def _ensemble_kernel(x_ref, w_ref, b_ref, o_ref, *, nfold, oc):
    """Fused per-tile:  max_m ( W_m @ x + b_m ), spatial axis on lanes.

    x_ref: (C_in, TILE_S)        VMEM tile of one batch's flattened voxels
    w_ref: (nfold*OC, C_in)      all model weights, concatenated (resident)
    b_ref: (nfold*OC, 1)         all model biases  (resident)
    o_ref: (OC, TILE_S)          ensembled output tile (lane-dense)
    """
    x = x_ref[...].astype(jnp.float32)            # (C_in, TILE_S)
    w = w_ref[...].astype(jnp.float32)            # (nfold*OC, C_in)

    # One fused MXU contraction for all models, f32 accumulation.
    y = jnp.dot(w, x, preferred_element_type=jnp.float32)   # (nfold*OC, TILE_S)
    # Bias: single broadcast add (hoisted out of any per-model loop).
    y = y + b_ref[...].astype(jnp.float32)

    # Elementwise max over the nfold row-groups (VPU, static slices).
    acc = y[0:oc]
    for m in range(1, nfold):
        acc = jnp.maximum(acc, y[m * oc:(m + 1) * oc])

    o_ref[...] = acc.astype(o_ref.dtype)


def ensemble_forward(x, weights, biases, *, tile_s=1024):
    """x: [B, C_in, D, H, W] (NCDHW); weights: [nfold, C_in, OC]; biases: [nfold, OC].

    Returns out_e: [B, OC, D, H, W] = per-class elementwise max over models of
    the 1x1x1-conv predictions (the EnsembleModel forward).
    """
    B, C_in, D, H, W = x.shape
    nfold, _, OC = weights.shape
    Sp = D * H * W

    # NCDHW -> [B, C_in, DHW]: pure reshape, no transpose / extra HBM pass.
    x_flat = x.reshape(B, C_in, Sp)

    # Spatial tile on the lane axis: multiple of 128, as large as useful.
    ts = min(tile_s, _round_up(Sp, 128))
    ts = _round_up(ts, 128)
    Sp_pad = _round_up(Sp, ts)
    if Sp_pad != Sp:
        x_flat = jnp.pad(x_flat, ((0, 0), (0, 0), (0, Sp_pad - Sp)))

    # Concatenate weights/biases across models: W_cat [nfold*OC, C_in].
    w_cat = jnp.transpose(weights, (0, 2, 1)).reshape(nfold * OC, C_in)
    b_cat = biases.reshape(nfold * OC, 1)

    grid = (B, Sp_pad // ts)
    kernel = functools.partial(_ensemble_kernel, nfold=nfold, oc=OC)

    out_flat = pl.pallas_call(
        kernel,
        out_shape=jax.ShapeDtypeStruct((B, OC, Sp_pad), x.dtype),
        grid_spec=pltpu.PrefetchScalarGridSpec(
            num_scalar_prefetch=0,
            grid=grid,
            in_specs=[
                # x tile: (C_in, ts), batch dim squeezed.
                pl.BlockSpec((None, C_in, ts), lambda b, s: (b, 0, s)),
                # all weights / biases resident across the grid.
                pl.BlockSpec((nfold * OC, C_in), lambda b, s: (0, 0)),
                pl.BlockSpec((nfold * OC, 1), lambda b, s: (0, 0)),
            ],
            out_specs=pl.BlockSpec((None, OC, ts), lambda b, s: (b, 0, s)),
        ),
        compiler_params=pltpu.CompilerParams(
            dimension_semantics=("parallel", "parallel")),
    )(x_flat, w_cat, b_cat)

    # Slice off spatial padding (pad columns hold max-of-biases, dropped here),
    # then reshape straight back to NCDHW — no transpose needed.
    out = out_flat[:, :, :Sp].reshape(B, OC, D, H, W)
    return out


def ensemble_reference(x, weights, biases):
    """Pure-JAX reference matching the torch forward semantics."""
    per_model = jnp.einsum("bcdhw,mco->mbodhw", x, weights) \
        + biases[:, None, :, None, None, None]
    return jnp.max(per_model, axis=0).astype(x.dtype)


if __name__ == "__main__":
    key = jax.random.PRNGKey(0)
    k_x, k_w, k_b = jax.random.split(key, 3)

    B, C_in, D, H, W = 2, 4, 8, 16, 16   # small NCDHW 3-D volume (DHW = 2048)
    outchannels = 3
    nfold = 3                             # number of ensembled models
    # TODO(synk): general MONAI sliding_window_inference (overlapping ROI
    # blending) is not reimplemented; roi covers the full volume here.

    x = jax.random.normal(k_x, (B, C_in, D, H, W), dtype=jnp.float32)
    weights = 0.1 * jax.random.normal(k_w, (nfold, C_in, outchannels),
                                      dtype=jnp.float32)
    biases = 0.1 * jax.random.normal(k_b, (nfold, outchannels),
                                     dtype=jnp.float32)

    out = ensemble_forward(x, weights, biases)
    out = jax.block_until_ready(out)

    ref = ensemble_reference(x, weights, biases)
    assert out.shape == (B, outchannels, D, H, W), out.shape
    assert jnp.allclose(out, ref, atol=1e-5, rtol=1e-5), \
        float(jnp.max(jnp.abs(out - ref)))

    print("KERNEL_OK")
</pallas_src>

<mosaic_0001>
module attributes {stable_mosaic.version = 11 : i64} {
  func.func @_ensemble_kernel(%arg0: i32, %arg1: i32, %arg2: memref<1x4x1024xf32, #tpu.memory_space<vmem>>, %arg3: memref<9x4xf32, #tpu.memory_space<vmem>>, %arg4: memref<9x1xf32, #tpu.memory_space<vmem>>, %arg5: memref<1x3x1024xf32, #tpu.memory_space<vmem>>) attributes {dimension_semantics = [#tpu.dimension_semantics<parallel>, #tpu.dimension_semantics<parallel>], iteration_bounds = array<i64: 2, 2>, scalar_prefetch = 0 : i64, scratch_operands = 0 : i64, tpu.core_type = #tpu.core_type<tc>, window_params = [{transform_indices = @transform_0, window_bounds = array<i64: 1, 4, 1024>}, {pipeline_mode = #tpu.pipeline_mode<synchronous>, transform_indices = @transform_1, window_bounds = array<i64: 9, 4>}, {pipeline_mode = #tpu.pipeline_mode<synchronous>, transform_indices = @transform_2, window_bounds = array<i64: 9, 1>}, {transform_indices = @transform_3, window_bounds = array<i64: 1, 3, 1024>}]} {
    %c0 = arith.constant 0 : index
    %c0_0 = arith.constant 0 : index
    %c0_1 = arith.constant 0 : index
    %0 = vector.load %arg2[%c0, %c0_0, %c0_1] : memref<1x4x1024xf32, #tpu.memory_space<vmem>>, vector<1x4x1024xf32>
    %1 = vector.shape_cast %0 : vector<1x4x1024xf32> to vector<4x1024xf32>
    %c0_2 = arith.constant 0 : index
    %c0_3 = arith.constant 0 : index
    %2 = vector.load %arg3[%c0_2, %c0_3] : memref<9x4xf32, #tpu.memory_space<vmem>>, vector<9x4xf32>
    %cst = arith.constant dense<0.000000e+00> : vector<9x1024xf32>
    %3 = tpu.matmul %2, %1, %cst {dimension_numbers = #tpu.dot_dimension_numbers<[1], [0], [0], [1], [0, 0, 1, 1], [], []>} : vector<9x4xf32>, vector<4x1024xf32>, vector<9x1024xf32> -> vector<9x1024xf32>
    %c0_4 = arith.constant 0 : index
    %c0_5 = arith.constant 0 : index
    %4 = vector.load %arg4[%c0_4, %c0_5] : memref<9x1xf32, #tpu.memory_space<vmem>>, vector<9x1xf32>
    %5 = vector.broadcast %4 : vector<9x1xf32> to vector<9x1024xf32>
    %6 = arith.addf %3, %5 : vector<9x1024xf32>
    %7 = vector.extract_strided_slice %6 {offsets = [0, 0], sizes = [3, 1024], strides = [1, 1]} : vector<9x1024xf32> to vector<3x1024xf32>
    %8 = vector.extract_strided_slice %6 {offsets = [3, 0], sizes = [3, 1024], strides = [1, 1]} : vector<9x1024xf32> to vector<3x1024xf32>
    %9 = arith.maximumf %7, %8 : vector<3x1024xf32>
    %10 = vector.extract_strided_slice %6 {offsets = [6, 0], sizes = [3, 1024], strides = [1, 1]} : vector<9x1024xf32> to vector<3x1024xf32>
    %11 = arith.maximumf %9, %10 : vector<3x1024xf32>
    %c0_6 = arith.constant 0 : index
    %c0_7 = arith.constant 0 : index
    %c0_8 = arith.constant 0 : index
    %12 = vector.load %arg5[%c0_6, %c0_7, %c0_8] : memref<1x3x1024xf32, #tpu.memory_space<vmem>>, vector<1x3x1024xf32>
    %13 = vector.shape_cast %12 : vector<1x3x1024xf32> to vector<3x1024xf32>
    %14 = vector.shape_cast %11 : vector<3x1024xf32> to vector<1x3x1024xf32>
    tpu.vector_store %arg5[%c0_6, %c0_7, %c0_8], %14 {strides = array<i32>} : memref<1x3x1024xf32, #tpu.memory_space<vmem>>, vector<1x3x1024xf32>,
    return
  }
  func.func @transform_0(%arg0: i32, %arg1: i32) -> (i32, i32, i32) {
    %c0_i32 = arith.constant 0 : i32
    %c0_i32_0 = arith.constant 0 : i32
    return %arg0, %c0_i32, %arg1 : i32, i32, i32
  }
  func.func @transform_1(%arg0: i32, %arg1: i32) -> (i32, i32) {
    %c0_i32 = arith.constant 0 : i32
    %c0_i32_0 = arith.constant 0 : i32
    %c0_i32_1 = arith.constant 0 : i32
    return %c0_i32, %c0_i32_0 : i32, i32
  }
  func.func @transform_2(%arg0: i32, %arg1: i32) -> (i32, i32) {
    %c0_i32 = arith.constant 0 : i32
    %c0_i32_0 = arith.constant 0 : i32
    %c0_i32_1 = arith.constant 0 : i32
    return %c0_i32, %c0_i32_0 : i32, i32
  }
  func.func @transform_3(%arg0: i32, %arg1: i32) -> (i32, i32, i32) {
    %c0_i32 = arith.constant 0 : i32
    %c0_i32_0 = arith.constant 0 : i32
    return %arg0, %c0_i32, %arg1 : i32, i32, i32
  }
}

</mosaic_0001>

<bundles_post_ra>
// kernel: tpu_custom_call.1
= control target key start
LH: loop header
LB: loop body
LE: loop exit
PB: predicated region body
PF: predicated region fallthrough
CT: control target
= control target key end

     0   :  { %8 = vsyncpa [#allocation3], 0  ;;  %s1183_s0 = inlined_call_operand.hbm [shape: f32[2,4,2048], index: 0, kind: input, shape index: {}]   ;;  %s1184_s1 = inlined_call_operand.vmem [shape: f32[9,4], index: 1, kind: input, shape index: {}]   ;;  %s1185_s2 = inlined_call_operand.vmem [shape: f32[9,1], index: 2, kind: input, shape index: {}]   ;;  %s1186_s3 = inlined_call_operand.vmem [shape: f32[2,3,2048], index: 3, kind: output, shape index: {}]  }
   0x1   :  { %10 = vsyncpa [#allocation3 + $0x1], 0  ;;  %s1002_s12 = smov 0   ;;  %s1004_s13 = smov 0  }
   0x2   :  { %s1006_s14 = smov 0   ;;  %s1008_s15 = smov 0  }
   0x3   :  { %s1010_s16 = smov 0   ;;  %s1012_s17 = smov 0  }
   0x4   :  { %s1014_s18 = smov 0   ;;  %s1016_s19 = smov 0  }
   0x5 LB: > { %s774_s20 = sadd.s32 4294967295, %s977_s19   ;;  %s25_s21 = sadd.s32 1, %s969_s17  ;;  %s977_s19 = sphi %s1016_s19, %s16_s19   ;;  %s973_s18 = sphi %s1014_s18, %s1196_s18   ;;  %s969_s17 = sphi %s1012_s17, %s1195_s17   ;;  %s965_s16 = sphi %s1010_s16, %s1194_s16   ;;  %s961_s15 = sphi %s1008_s15, %s1193_s15   ;;  %s957_s14 = sphi %s1006_s14, %s1192_s14   ;;  %s953_s13 = sphi %s1004_s13, %s1191_s13   ;;  %s949_s12 = sphi %s1002_s12, %s1190_s12  }
   0x6   : > { %p26_p0 = scmp.ge.s32.totalorder %s25_s21, 2  ;;  %s28_s22 = sadd.s32 1, %s973_s18 }
   0x7   : > { %s37_s23 = sadd.s32 1, %s957_s14  ;;  %p44_p1 = scmp.ne.s32.totalorder %s957_s14, %s953_s13 }
   0x8   : > { %s1198_s21 = smov (%p26_p0, %s25_s21), 0  ;;  %s1200_s22 = smov (!%p26_p0, %s28_s22), %s973_s18 }
   0x9   : > { %s33_s24 = ssub.s32 %s969_s17, %s1198_s21  ;;  %p45_p2 = scmp.eq.s32.totalorder %s977_s19, 0 }
   0xa   : > { %p30_p3 = scmp.ge.s32.totalorder %s1200_s22, 2  ;;  %p50_p4 = scmp.ne.s32.totalorder %s953_s13, %s949_s12 }
   0xb   : > { %p1053_p5 = por %p45_p2, %p44_p1  ;;  %p51_p6 = scmp.eq.s32.totalorder %s774_s20, 0 }
   0xc   : > { %s1202_s22 = smov (%p30_p3, %s1200_s22), 0  ;;  %p811_p8 = scmp.lt.s32.totalorder %s977_s19, 4 }
   0xd   : > { %p1059_p7 = por %p51_p6, %p50_p4  ;;  %s32_s27 = ssub.s32 %s973_s18, %s1202_s22 }
   0xe   : > { %s34_s28 = sor.u32 %s33_s24, %s32_s27  ;;  %s150_s29 = sand.u32 1, %s957_s14  }
   0xf   : > { %p35_p9 = scmp.eq.s32.totalorder %s34_s28, 0  ;;  %s778_s30 = sshll.u32 %s150_s29, 5 }
  0x10   : > { %s779_s4 = sshll.u32 %s969_s17, 3  ;;  %s780_s6 = sshll.u32 %s973_s18, 4 }
  0x11   : > { %s1069_s5 = scalar_select %p35_p9, %s957_s14, %s37_s23  }
  0x12   : > { %s160_s7 = sadd.s32 %s780_s6, %s779_s4  ;;  %s154_s8 = scalar_lea.vmem [#allocation2], %s778_s30 }
  0x13   : > { %s164_s9 = sshll.u32 %s154_s8, 4  ;;  %s781_s10 = sshll.u32 %s160_s7, 6  ;;  %s165_s9 = int_to_ptr.vmem [resolvable:$true] %s164_s9 }
  0x14   : > { %s162_s20 = scalar_lea.hbm %s1183_s0, %s781_s10  ;;  %p1079_p10 = pnand %p811_p8, %p1053_p5 }
  0x15   : > { %p782_p11 = scmp.ge.s32.totalorder %s977_s19, 1  ;;  %p169_p12 = scmp.lt.s32.totalorder %s977_s19, 5 }
  0x16   : > { %s151_s23 = scalar_lea.sflag [#allocation3], %s150_s29  ;;  %p885_p13 = pneg %p1079_p10 }
  0x17   : > { %s896_s27 = scalar_lea.vmem %s165_s9, 512  ;;  %s979_s28 = smov [#allocation2]  }
  0x18   : > { %p897_p0 = scmp.ne.s32.totalorder %s165_s9, %s896_s27  ;;  %s901_s30 = sshll.u32 %s979_s28, 4  ;;  %s902_s30 = int_to_ptr.vmem [resolvable:$false] %s901_s30 }
  0x19   : > { %s903_s4 = scalar_lea.vmem %s902_s30, 1024  ;;  %p904_p3 = scmp.lt.s32.totalorder %s165_s9, %s902_s30 }
  0x1a   : > { %p899_p1 = pnand %p897_p0, %p885_p13  ;;  %p905_p4 = scmp.lt.s32.totalorder %s903_s4, %s896_s27 }
  0x1c   : > { %p900_p2 = pneg %p899_p1  ;;  %p906_p5 = por %p905_p4, %p904_p3 }
  0x1e   : > { %p907_p6 = pnand %p906_p5, %p900_p2 }
  0x20   : > { %910 = shalt.err (!%p907_p6)
}
  0x21   : > { %810 = dma.hbm_to_vmem [thread:$0]  (!%p1079_p10), %s162_s20, 512, %s165_s9, %s151_s23  }
  0x22   : > { %p170_p8 = pnand %p782_p11, %p169_p12 }
  0x23   : > { %s175_s25 = sand.u32 (!%p170_p8), 1, %s953_s13  }
  0x24   : > { %173 = sbr.rel (%p170_p8) target bundleno = 264 (0x108), region = 32  ;;  %s783_s29 = sshll.u32 (!%p170_p8), %s175_s25, 5 }
  0x25   : > { %s176_s6 = scalar_lea.sflag (!%p170_p8), [#allocation3], %s175_s25  ;;  %s179_s7 = scalar_lea.vmem (!%p170_p8), [#allocation2], %s783_s29 }
  0x29   : > { %944 = dma.done.wait (%p1059_p7), %s176_s6, 512  }
  0x2a   : > { %946 = vsyncadd (%p1059_p7), %s176_s6, 4294966784  ;;  %v980_v0 = vmov 0.0   ;;  %v981_v1 = vmov 0   ;;  %v217_v2 = vld [vmem:[%s179_s7] sm:$0xff]  ;;  %vm250_vm0 = vcmask 1043456   ;;  %v218_v3 = vld [vmem:[%s179_s7 + $0x8] sm:$0xff] }
  0x2b   : > { %331 = vmatprep.mubr.f32.mxu0 %v980_v0  ;;  %408 = vmatprep.mubr.f32.mxu1 %v980_v0  ;;  %v239_v4 = vcombine.high %v217_v2, %v217_v2  ;;  %v240_v5 = vcombine.high %v218_v3, %v218_v3  ;;  %v219_v6 = vld [vmem:[%s179_s7 + $0x10] sm:$0xff]  ;;  %v220_v7 = vld [vmem:[%s179_s7 + $0x18] sm:$0xff]  ;;  %v221_v8 = vld [vmem:[%s1184_s1] sm:$0xff]  ;;  %vm243_vm1 = vcmask 31744   ;;  %s784_s23 = sshll.u32 %s961_s15, 3  ;;  %p208_p7 = scmp.lt.s32.totalorder %s965_s16, 1 }
  0x2c   : > { %878 = vset.pattern.permute.xlu0 %v981_v1  ;;  %v241_v9 = vcombine.high %v219_v6, %v219_v6  ;;  %v242_v10 = vcombine.high %v220_v7, %v220_v7  ;;  %v222_v11 = vld [vmem:[%s1184_s1 + $0x8] sm:$0x1]  ;;  %v223_v12 = vld [vmem:[%s1185_s2] sm:$0xff]  ;;  %p210_p9 = scmp.lt.s32.totalorder %s784_s23, 15  ;;  %vm615_vm2 = vcmask 1041408  }
  0x2d   : > { %787 = vmatprep.subr.msk.mxu0 %vm250_vm0, %v239_v4  ;;  %791 = vmatprep.subr.msk.mxu1 %vm250_vm0, %v240_v5  ;;  %v224_v13 = vld [vmem:[%s1185_s2 + $0x8] sm:$0x1]  ;;  %s1204_s16 = smov (!%p208_p7, %s965_s16), 1 }
  0x2e   : > { %788 = vmatpush1.msk.msra.mxu0 %vm250_vm0, %v217_v2  ;;  %792 = vmatpush1.msk.msra.mxu1 %vm250_vm0, %v218_v3  ;;  %s1206_s23 = smov (!%p210_p9, %s784_s23), 15  ;;  %s785_s27 = sshll.u32 %s1204_s16, 4 }
  0x2f   : > { %789 = vmatmul.mubr.msk.f32.vlgmr.msra.gmra.mxu0 %vm243_vm1, %v221_v8  ;;  %793 = vmatmul.mubr.msk.f32.vlgmr.msra.gmra.mxu1 %vm243_vm1, %v221_v8  ;;  %s1133_s15 = sadd.s32 %s785_s27, %s1206_s23 }
  0x30   : > { %795 = vmatprep.subr.msk.mxu0 %vm250_vm0, %v241_v9  ;;  %799 = vmatprep.subr.msk.mxu1 %vm250_vm0, %v242_v10  ;;  %s786_s16 = sshll.u32 %s1133_s15, 2 }
  0x31   : > { %796 = vmatpush1.msk.msra.mxu0 %vm250_vm0, %v219_v6  ;;  %800 = vmatpush1.msk.msra.mxu1 %vm250_vm0, %v220_v7  ;;  %s1145_s4 = scalar_lea.vmem %s1186_s3, %s786_s16 }
  0x32   : > { %337 = vmatprep.mubr.f32.mxu0 %v980_v0  ;;  %414 = vmatprep.mubr.f32.mxu1 %v980_v0 }
  0x33   : > { %790 = vmatmul.mubr.msk.f32.gmra.mxu0 %vm243_vm1, %v222_v11  ;;  %794 = vmatmul.mubr.msk.f32.gmra.mxu1 %vm243_vm1, %v222_v11 }
  0x34   : > { %485 = vmatprep.mubr.f32.mxu0 %v980_v0  ;;  %562 = vmatprep.mubr.f32.mxu1 %v980_v0 }
  0x35   : > { %227 = vperm.xlu0 %878, %v223_v12  }
  0x37   : > { %797 = vmatmul.mubr.msk.f32.vlgmr.msra.gmra.mxu0 %vm243_vm1, %v221_v8  ;;  %801 = vmatmul.mubr.msk.f32.vlgmr.msra.gmra.mxu1 %vm243_vm1, %v221_v8 }
  0x38   : > { %491 = vmatprep.mubr.f32.mxu0 %v980_v0  ;;  %568 = vmatprep.mubr.f32.mxu1 %v980_v0 }
  0x39   : > { %232 = vperm.xlu0 %878, %v224_v13  }
  0x3b   : > { %798 = vmatmul.mubr.msk.f32.gmra.mxu0 %vm243_vm1, %v222_v11  ;;  %802 = vmatmul.mubr.msk.f32.gmra.mxu1 %vm243_vm1, %v222_v11 }
  0xb0   : > { %v228_v14 = vpop.permute.xlu0 %227 }
  0xb4   : > { %v1129_v19 = vpop.permute.xlu0 %232 }
  0xef   : > { %v333_v15 = vpop.f32.mrf.mxu0  ;;  %v410_v16 = vpop.f32.mrf.mxu1 }
  0xf0   : > { %v334_v17 = vadd.f32 %v333_v15, %v228_v14  ;;  %v411_v18 = vadd.f32 %v410_v16, %v228_v14 }
  0xf1   : > { %v335_v20 = vpop.f32.mrf.mxu0  ;;  %v412_v21 = vpop.f32.mrf.mxu1 }
  0xf2   : > { %v583_v22 = vrot.slane %v334_v17, 3  ;;  %v585_v23 = vrot.slane %v411_v18, 3  ;;  %v336_v24 = vadd.f32 %v335_v20, %v228_v14  ;;  %v413_v25 = vadd.f32 %v412_v21, %v228_v14 }
  0xf3   : > { %v339_v26 = vpop.f32.mrf.mxu0  ;;  %v416_v27 = vpop.f32.mrf.mxu1  ;;  %v616_v30 = vrot.slane %v334_v17, 6  ;;  %v622_v31 = vrot.slane %v411_v18, 6 }
  0xf4   : > { %v340_v28 = vadd.f32 %v339_v26, %v1129_v19  ;;  %v417_v29 = vadd.f32 %v416_v27, %v1129_v19  ;;  %v584_v32 = vrot.slane %v336_v24, 3  ;;  %v586_v33 = vrot.slane %v413_v25, 3 }
  0xf5   : > { %v341_v34 = vpop.f32.mrf.mxu0  ;;  %v418_v35 = vpop.f32.mrf.mxu1  ;;  %v599_v40 = vmax.f32 %v334_v17, %v583_v22  ;;  %v601_v41 = vmax.f32 %v411_v18, %v585_v23  ;;  %v619_v42 = vrot.slane %v336_v24, 6  ;;  %v625_v43 = vrot.slane %v413_v25, 6 }
  0xf6   : > { %v617_v36 = vrot.slane %v340_v28, 6  ;;  %v623_v37 = vrot.slane %v417_v29, 6  ;;  %v342_v38 = vadd.f32 %v341_v34, %v1129_v19  ;;  %v419_v39 = vadd.f32 %v418_v35, %v1129_v19 }
  0xf7   : > { %v487_v44 = vpop.f32.mrf.mxu0  ;;  %v564_v45 = vpop.f32.mrf.mxu1  ;;  %v600_v50 = vmax.f32 %v336_v24, %v584_v32  ;;  %v602_v51 = vmax.f32 %v413_v25, %v586_v33 }
  0xf8   : > { %v618_v46 = vsel %vm615_vm2, %v616_v30, %v617_v36  ;;  %v624_v47 = vsel %vm615_vm2, %v622_v31, %v623_v37  ;;  %v620_v48 = vrot.slane %v342_v38, 6  ;;  %v626_v49 = vrot.slane %v419_v39, 6 }
  0xf9   : > { %v488_v52 = vadd.f32 %v487_v44, %v228_v14  ;;  %v565_v53 = vadd.f32 %v564_v45, %v228_v14  ;;  %v489_v54 = vpop.f32.mrf.mxu0  ;;  %v566_v55 = vpop.f32.mrf.mxu1  ;;  %v648_v60 = vmax.f32 %v599_v40, %v618_v46  ;;  %v650_v61 = vmax.f32 %v601_v41, %v624_v47 }
  0xfa   : > { %v621_v56 = vsel %vm615_vm2, %v619_v42, %v620_v48  ;;  %v627_v57 = vsel %vm615_vm2, %v625_v43, %v626_v49  ;;  %v490_v58 = vadd.f32 %v489_v54, %v228_v14  ;;  %v567_v59 = vadd.f32 %v566_v55, %v228_v14 }
  0xfb   : > { %v649_v62 = vmax.f32 %v600_v50, %v621_v56  ;;  %v651_v63 = vmax.f32 %v602_v51, %v627_v57  ;;  %v493_v0 = vpop.f32.mrf.mxu0  ;;  %v570_v1 = vpop.f32.mrf.mxu1  ;;  %v587_v2 = vrot.slane %v488_v52, 3  ;;  %v589_v7 = vrot.slane %v565_v53, 3 }
  0xfc   : > { %v588_v8 = vrot.slane %v490_v58, 3  ;;  %v590_v9 = vrot.slane %v567_v59, 3  ;;  %v494_v10 = vadd.f32 %v493_v0, %v1129_v19  ;;  %v628_v11 = vrot.slane %v488_v52, 6 }
  0xfd   : > { %v664_v3 = vcombine.low %v648_v60, %v649_v62  ;;  %v665_v4 = vcombine.low %v650_v61, %v651_v63  ;;  %v495_v5 = vpop.f32.mrf.mxu0  ;;  %v572_v6 = vpop.f32.mrf.mxu1  ;;  %v571_v12 = vadd.f32 %v570_v1, %v1129_v19  ;;  %v603_v15 = vmax.f32 %v488_v52, %v587_v2 }
  0xfe   : > { %v496_v13 = vadd.f32 %v495_v5, %v1129_v19  ;;  %v573_v14 = vadd.f32 %v572_v6, %v1129_v19  ;;  %v634_v16 = vrot.slane %v565_v53, 6  ;;  %v631_v17 = vrot.slane %v490_v58, 6 }
  0xff   : > { %672 = vst [vmem:[%s1145_s4] sm:$0x77] %v664_v3  ;;  %673 = vst [vmem:[%s1145_s4 + $0x8] sm:$0x77] %v665_v4  ;;  %v629_v18 = vrot.slane %v494_v10, 6  ;;  %v637_v20 = vrot.slane %v567_v59, 6  ;;  %v635_v21 = vrot.slane %v571_v12, 6  ;;  %v605_v24 = vmax.f32 %v565_v53, %v589_v7 }
 0x100   : > { %v632_v22 = vrot.slane %v496_v13, 6  ;;  %v638_v23 = vrot.slane %v573_v14, 6  ;;  %v604_v25 = vmax.f32 %v490_v58, %v588_v8  ;;  %v606_v26 = vmax.f32 %v567_v59, %v590_v9 }
 0x101   : > { %v630_v27 = vsel %vm615_vm2, %v628_v11, %v629_v18  ;;  %v636_v28 = vsel %vm615_vm2, %v634_v16, %v635_v21 }
 0x102   : > { %v633_v29 = vsel %vm615_vm2, %v631_v17, %v632_v22  ;;  %v639_v19 = vsel %vm615_vm2, %v637_v20, %v638_v23  ;;  %v652_v30 = vmax.f32 %v603_v15, %v630_v27  ;;  %v654_v31 = vmax.f32 %v605_v24, %v636_v28 }
 0x103   : > { %v653_v32 = vmax.f32 %v604_v25, %v633_v29  ;;  %v655_v33 = vmax.f32 %v606_v26, %v639_v19 }
 0x105   : > { %v666_v34 = vcombine.low %v652_v30, %v653_v32  ;;  %v667_v35 = vcombine.low %v654_v31, %v655_v33 }
 0x107   : > { %674 = vst [vmem:[%s1145_s4 + $0x10] sm:$0x77] %v666_v34  ;;  %675 = vst [vmem:[%s1145_s4 + $0x18] sm:$0x77] %v667_v35 }
 0x108 PF: > { %s16_s19 = sadd.s32 1, %s977_s19   ;;  %s1190_s12 = smov %s953_s13 }
 0x109   : > { %p13_p10 = scmp.ge.s32.totalorder %s16_s19, 6   ;;  %s1191_s13 = smov %s957_s14 }
 0x10a   : > { %s1192_s14 = smov %s1069_s5  ;;  %s1193_s15 = smov %s969_s17 }
 0x10b   : > { %s1194_s16 = smov %s973_s18  ;;  %s1195_s17 = smov %s1198_s21 }
 0x10c   : > { %s1196_s18 = smov %s1202_s22  ;;  %15 = sbr.rel (!%p13_p10) target bundleno = 5 (0x5), region = 72 }
 0x111   :  { %706 = vsyncpa [#allocation3], 1 }
 0x112   :  { %708 = vsyncpa [#allocation3 + $0x1], 1 }

</bundles_post_ra>
